<compile_context>
chip_gen: v5e
topology: v5e:2x2
jax: 0.10.0
libtpu: 0.0.40
codegen_flags: <defaults>
</compile_context>

<pallas_src>
import math

import jax
import jax.numpy as jnp
from jax import lax
from jax.experimental import pallas as pl
from jax.experimental.pallas import tpu as pltpu

NUM_STEPS = 19

_SUB_ROWS = 32                         # vreg-resident inner chunk (keep at 32)
_TARGET_TILE_BYTES = 2 * 1024 * 1024   # ~2 MiB per tile
_MIN_GRID = 8                          # aim for >= 8 grid steps on medium inputs
_FALLBACK_LANES = 512                  # lane width for the (rare) pad path


def _poly_coeffs_desc(num_steps, tune, init_displacement, scaling_factor):
    """Descending Horner coefficients of the closed form, in w = x + tune.

    One reference-loop step is the *simultaneous* update
        (y, v) <- (y + v, v - y*dt),  i.e.  s' = M s,  M = [[1, 1], [-dt, 1]].
    With M = I + N and N^2 = -dt*I:
        M^n = A(dt)*I + B(dt)*N,
        A(u) = sum_j C(n,2j)(-u)^j,   B(u) = sum_j C(n,2j+1)(-u)^j,
        y_n  = A(dt)*init + dt*B(dt),   dt = w / n.
    Folding scaling_factor, init and 1/n^k gives a single polynomial in w:
        out(w) = sum_k c_k w^k,  degree = ceil(n/2) + ... = len(beta).
    """
    n = num_steps
    alpha = [math.comb(n, 2 * j) * ((-1.0) ** j) for j in range(n // 2 + 1)]
    beta = [math.comb(n, 2 * j + 1) * ((-1.0) ** j) for j in range((n + 1) // 2)]
    scale = float(scaling_factor)
    init = float(init_displacement)
    deg = len(beta)                       # 10 for n = 19
    c = [0.0] * (deg + 1)
    c[0] = scale * init * alpha[0]
    for k in range(1, deg + 1):
        a_k = alpha[k] if k < len(alpha) else 0.0
        c[k] = scale * (init * a_k + beta[k - 1]) / float(n) ** k
    coeffs_desc = list(reversed(c))       # c_deg, ..., c_1, c_0
    return coeffs_desc, (c[0] != 0.0), float(tune)


def _choose_tile_rows(rows, lanes):
    if rows <= _SUB_ROWS:
        return rows                       # single block covering the full dim
    cap_bytes = _TARGET_TILE_BYTES // (lanes * 4)
    cap_grid = pl.cdiv(rows, _MIN_GRID)
    tr = min(cap_bytes, cap_grid)
    return max(_SUB_ROWS, (tr // _SUB_ROWS) * _SUB_ROWS)


def _build_kernel(coeffs_desc, has_c0, tune_f, tile_rows, sub_rows):
    n_sub = tile_rows // sub_rows
    hi = coeffs_desc[:-1]                 # c_deg ... c_1
    c0 = coeffs_desc[-1]

    def horner(xs):
        w = xs + tune_f
        acc = w * hi[0] + hi[1]
        for coef in hi[2:]:
            acc = acc * w + coef
        return acc * w + c0 if has_c0 else acc * w

    def kernel(x_ref, o_ref):
        def compute(r):
            xs = x_ref[pl.ds(r, sub_rows), :]
            o_ref[pl.ds(r, sub_rows), :] = horner(xs).astype(o_ref.dtype)

        if n_sub == 1:
            compute(0)
        else:
            def body(i, carry):
                compute(pl.multiple_of(i * sub_rows, sub_rows))
                return carry
            lax.fori_loop(0, n_sub, body, 0, unroll=2)

    return kernel


def custom_layer(x, tune=3.0, init_displacement=0.0, scaling_factor=1.0):
    """x: f32[batch, N, num_channels] -> same shape (vector_transform forward)."""
    # TODO(synk): tune / init_displacement / scaling_factor are baked in as
    # trace-time constants (the nn.Parameter init values); use SMEM scalar
    # prefetch if they ever become traced / per-step values.
    orig_shape = x.shape
    total = int(x.size)
    dtype = x.dtype

    coeffs_desc, has_c0, tune_f = _poly_coeffs_desc(
        NUM_STEPS, tune, init_displacement, scaling_factor)

    last = int(orig_shape[-1]) if len(orig_shape) else 1
    if last > 0 and last % 128 == 0:
        # Fast path: contiguous reshape, zero extra HBM traffic (no pad/slice).
        lanes = last
        rows = total // lanes
        x2d = x.reshape(rows, lanes)
        trimmed = False
    else:
        # Fallback for lane-misaligned channel dims: flatten + pad once.
        lanes = _FALLBACK_LANES
        rows = pl.cdiv(total, lanes)
        flat = x.reshape(-1)
        pad = rows * lanes - total
        if pad:
            flat = jnp.pad(flat, (0, pad))
        x2d = flat.reshape(rows, lanes)
        trimmed = pad > 0

    tile_rows = _choose_tile_rows(rows, lanes)
    grid = pl.cdiv(rows, tile_rows)        # partial last block handled by Pallas
    sub_rows = min(_SUB_ROWS, tile_rows)

    kernel = _build_kernel(coeffs_desc, has_c0, tune_f, tile_rows, sub_rows)

    def run(deep_buffer):
        if deep_buffer:
            in_spec = pl.BlockSpec((tile_rows, lanes), lambda i: (i, 0),
                                   pipeline_mode=pl.Buffered(3))
        else:
            in_spec = pl.BlockSpec((tile_rows, lanes), lambda i: (i, 0))
        return pl.pallas_call(
            kernel,
            out_shape=jax.ShapeDtypeStruct((rows, lanes), dtype),
            grid_spec=pltpu.PrefetchScalarGridSpec(
                num_scalar_prefetch=0,
                grid=(grid,),
                in_specs=[in_spec],
                out_specs=pl.BlockSpec((tile_rows, lanes), lambda i: (i, 0)),
            ),
            compiler_params=pltpu.CompilerParams(
                dimension_semantics=("parallel",),
            ),
        )(x2d)

    if grid >= 3:
        try:
            out2d = run(True)
        except Exception:  # pipeline_mode=Buffered unsupported on this build
            out2d = run(False)
    else:
        out2d = run(False)

    if trimmed:
        return out2d.reshape(-1)[:total].reshape(orig_shape)
    return out2d.reshape(orig_shape)


def _reference(x, tune=3.0, init_displacement=0.0, scaling_factor=1.0):
    """Direct transcription of the PyTorch vector_transform loop."""
    dt = (x + tune) / NUM_STEPS
    y = jnp.zeros_like(x) + init_displacement
    v = dt
    for _ in range(NUM_STEPS):
        y, v = (y + v, v - y * dt)
    return y * scaling_factor


if __name__ == "__main__":
    key = jax.random.PRNGKey(0)
    k1, k2, k3 = jax.random.split(key, 3)

    # nn.Parameter init values from the module.
    tune = 3.0
    init_displacement = 0.0
    scaling_factor = 1.0

    cases = [
        (k1, (2, 8, 128)),     # fast path, single block
        (k2, (5, 256, 512)),   # fast path, multi-tile grid (grid = 8)
        (k3, (3, 17, 24)),     # lane-misaligned channels -> fallback pad path
    ]
    for kk, shape in cases:
        x = jax.random.uniform(kk, shape, dtype=jnp.float32)
        out = jax.block_until_ready(
            custom_layer(x, tune, init_displacement, scaling_factor))
        ref = _reference(x, tune, init_displacement, scaling_factor)
        assert out.shape == x.shape, f"shape mismatch for {shape}"
        assert jnp.allclose(out, ref, rtol=1e-4, atol=1e-4), \
            f"mismatch vs reference for shape {shape}"

    print("KERNEL_OK")
</pallas_src>

<mosaic_0001>
module attributes {stable_mosaic.version = 11 : i64} {
  func.func @kernel(%arg0: i32, %arg1: memref<16x128xf32, #tpu.memory_space<vmem>>, %arg2: memref<16x128xf32, #tpu.memory_space<vmem>>) attributes {dimension_semantics = [#tpu.dimension_semantics<parallel>], iteration_bounds = array<i64: 1>, scalar_prefetch = 0 : i64, scratch_operands = 0 : i64, tpu.core_type = #tpu.core_type<tc>, window_params = [{transform_indices = @transform_0, window_bounds = array<i64: 16, 128>}, {transform_indices = @transform_1, window_bounds = array<i64: 16, 128>}]} {
    %c0 = arith.constant 0 : index
    %c0_0 = arith.constant 0 : index
    %0 = vector.load %arg1[%c0, %c0_0] : memref<16x128xf32, #tpu.memory_space<vmem>>, vector<16x128xf32>
    %cst = arith.constant 3.000000e+00 : f32
    %1 = vector.broadcast %cst : f32 to vector<16x128xf32>
    %2 = arith.addf %0, %1 : vector<16x128xf32>
    %cst_1 = arith.constant -1.6310377E-13 : f32
    %3 = vector.broadcast %cst_1 : f32 to vector<16x128xf32>
    %4 = arith.mulf %2, %3 : vector<16x128xf32>
    %cst_2 = arith.constant 5.2992416E-10 : f32
    %5 = vector.broadcast %cst_2 : f32 to vector<16x128xf32>
    %6 = arith.addf %4, %5 : vector<16x128xf32>
    %7 = arith.mulf %6, %2 : vector<16x128xf32>
    %cst_3 = arith.constant -2.28220657E-7 : f32
    %8 = vector.broadcast %cst_3 : f32 to vector<16x128xf32>
    %9 = arith.addf %7, %8 : vector<16x128xf32>
    %10 = arith.mulf %9, %2 : vector<16x128xf32>
    %cst_4 = arith.constant 3.03533488E-5 : f32
    %11 = vector.broadcast %cst_4 : f32 to vector<16x128xf32>
    %12 = arith.addf %10, %11 : vector<16x128xf32>
    %13 = arith.mulf %12, %2 : vector<16x128xf32>
    %cst_5 = arith.constant -0.00160655938 : f32
    %14 = vector.broadcast %cst_5 : f32 to vector<16x128xf32>
    %15 = arith.addf %13, %14 : vector<16x128xf32>
    %16 = arith.mulf %15, %2 : vector<16x128xf32>
    %cst_6 = arith.constant 0.0373078771 : f32
    %17 = vector.broadcast %cst_6 : f32 to vector<16x128xf32>
    %18 = arith.addf %16, %17 : vector<16x128xf32>
    %19 = arith.mulf %18, %2 : vector<16x128xf32>
    %cst_7 = arith.constant -0.386645287 : f32
    %20 = vector.broadcast %cst_7 : f32 to vector<16x128xf32>
    %21 = arith.addf %19, %20 : vector<16x128xf32>
    %22 = arith.mulf %21, %2 : vector<16x128xf32>
    %cst_8 = arith.constant 1.6952908 : f32
    %23 = vector.broadcast %cst_8 : f32 to vector<16x128xf32>
    %24 = arith.addf %22, %23 : vector<16x128xf32>
    %25 = arith.mulf %24, %2 : vector<16x128xf32>
    %cst_9 = arith.constant -2.68421054 : f32
    %26 = vector.broadcast %cst_9 : f32 to vector<16x128xf32>
    %27 = arith.addf %25, %26 : vector<16x128xf32>
    %28 = arith.mulf %27, %2 : vector<16x128xf32>
    %cst_10 = arith.constant 1.000000e+00 : f32
    %29 = vector.broadcast %cst_10 : f32 to vector<16x128xf32>
    %30 = arith.addf %28, %29 : vector<16x128xf32>
    %31 = arith.mulf %30, %2 : vector<16x128xf32>
    %c0_11 = arith.constant 0 : index
    %c0_12 = arith.constant 0 : index
    %32 = vector.load %arg2[%c0_11, %c0_12] : memref<16x128xf32, #tpu.memory_space<vmem>>, vector<16x128xf32>
    tpu.vector_store %arg2[%c0_11, %c0_12], %31 {strides = array<i32>} : memref<16x128xf32, #tpu.memory_space<vmem>>, vector<16x128xf32>,
    return
  }
  func.func @transform_0(%arg0: i32) -> (i32, i32) {
    %c0_i32 = arith.constant 0 : i32
    %c0_i32_0 = arith.constant 0 : i32
    return %arg0, %c0_i32 : i32, i32
  }
  func.func @transform_1(%arg0: i32) -> (i32, i32) {
    %c0_i32 = arith.constant 0 : i32
    %c0_i32_0 = arith.constant 0 : i32
    return %arg0, %c0_i32 : i32, i32
  }
}

</mosaic_0001>

<bundles_post_ra>
// kernel: tpu_custom_call.1
= control target key start
LH: loop header
LB: loop body
LE: loop exit
PB: predicated region body
PF: predicated region fallthrough
CT: control target
= control target key end

     0   :  { %6 = vsyncpa [#allocation3], 0  ;;  %s170_s0 = inlined_call_operand.hbm [shape: f32[16,128], index: 0, kind: input, shape index: {}]   ;;  %s171_s1 = inlined_call_operand.hbm [shape: f32[16,128], index: 1, kind: output, shape index: {}]  }
   0x1   :  { %7 = vsyncpa [#allocation4], 0  ;;  %s12_s8 = sshll.u32 %s170_s0, 4  ;;  %s144_s9 = smov [#allocation2]   ;;  %s13_s8 = int_to_ptr.hbm [resolvable:$true] %s12_s8 }
   0x2   :  { %s14_s10 = sshll.u32 %s144_s9, 4  ;;  %s145_s11 = smov 128   ;;  %s15_s10 = int_to_ptr.vmem [resolvable:$true] %s14_s10 }
   0x3   :  { %s146_s12 = smov 8  }
   0x4   :  { %20 = dma.hbm_to_vmem [thread:$0]  %s13_s8, 256, %s15_s10, [#allocation3], %s145_s11, %s145_s11, %s146_s12  }
   0x5   :  { %140 = dma.done.wait [#allocation3], 256  }
   0x6   :  { %141 = vsyncadd [#allocation3], 4294967040  ;;  %v25_v0 = vld [vmem:[#allocation2] sm:$0xff]  ;;  %v26_v1 = vld [vmem:[#allocation2 + $0x8] sm:$0xff]  ;;  %s147_s0 = smov [#allocation5]   ;;  %s75_s16 = sshll.u32 %s171_s1, 4  ;;  %s76_s16 = int_to_ptr.hbm [resolvable:$true] %s75_s16 }
   0x7   :  { %v27_v2 = vadd.f32 3.0, %v25_v0  ;;  %v28_v3 = vadd.f32 3.0, %v26_v1  ;;  %s73_s13 = sshll.u32 %s147_s0, 4  ;;  %s74_s13 = int_to_ptr.vmem [resolvable:$true] %s73_s13 }
   0x9   :  { %v29_v4 = vmul.f32 -1.6310377e-13, %v27_v2  ;;  %v30_v5 = vmul.f32 -1.6310377e-13, %v28_v3 }
   0xb   :  { %v31_v6 = vadd.f32 5.2992416e-10, %v29_v4  ;;  %v32_v7 = vadd.f32 5.2992416e-10, %v30_v5 }
   0xd   :  { %v33_v8 = vmul.f32 %v31_v6, %v27_v2  ;;  %v34_v9 = vmul.f32 %v32_v7, %v28_v3 }
   0xf   :  { %v35_v10 = vadd.f32 -2.2822066e-07, %v33_v8  ;;  %v36_v11 = vadd.f32 -2.2822066e-07, %v34_v9 }
  0x11   :  { %v37_v12 = vmul.f32 %v35_v10, %v27_v2  ;;  %v38_v13 = vmul.f32 %v36_v11, %v28_v3 }
  0x13   :  { %v39_v14 = vadd.f32 3.0353349e-05, %v37_v12  ;;  %v40_v15 = vadd.f32 3.0353349e-05, %v38_v13 }
  0x15   :  { %v41_v16 = vmul.f32 %v39_v14, %v27_v2  ;;  %v42_v17 = vmul.f32 %v40_v15, %v28_v3 }
  0x17   :  { %v43_v18 = vadd.f32 -0.0016065594, %v41_v16  ;;  %v44_v19 = vadd.f32 -0.0016065594, %v42_v17 }
  0x19   :  { %v45_v20 = vmul.f32 %v43_v18, %v27_v2  ;;  %v46_v21 = vmul.f32 %v44_v19, %v28_v3 }
  0x1b   :  { %v47_v22 = vadd.f32 0.037307877, %v45_v20  ;;  %v48_v23 = vadd.f32 0.037307877, %v46_v21 }
  0x1d   :  { %v49_v24 = vmul.f32 %v47_v22, %v27_v2  ;;  %v50_v25 = vmul.f32 %v48_v23, %v28_v3 }
  0x1f   :  { %v51_v26 = vadd.f32 -0.3866453, %v49_v24  ;;  %v52_v27 = vadd.f32 -0.3866453, %v50_v25 }
  0x21   :  { %v53_v28 = vmul.f32 %v51_v26, %v27_v2  ;;  %v54_v29 = vmul.f32 %v52_v27, %v28_v3 }
  0x23   :  { %v55_v30 = vadd.f32 1.6952908, %v53_v28  ;;  %v56_v31 = vadd.f32 1.6952908, %v54_v29 }
  0x25   :  { %v57_v32 = vmul.f32 %v55_v30, %v27_v2  ;;  %v58_v33 = vmul.f32 %v56_v31, %v28_v3 }
  0x27   :  { %v59_v34 = vadd.f32 -2.6842105, %v57_v32  ;;  %v60_v35 = vadd.f32 -2.6842105, %v58_v33 }
  0x29   :  { %v61_v36 = vmul.f32 %v59_v34, %v27_v2  ;;  %v62_v37 = vmul.f32 %v60_v35, %v28_v3 }
  0x2b   :  { %v63_v38 = vadd.f32 1.0, %v61_v36  ;;  %v64_v39 = vadd.f32 1.0, %v62_v37 }
  0x2d   :  { %v65_v40 = vmul.f32 %v63_v38, %v27_v2  ;;  %v66_v41 = vmul.f32 %v64_v39, %v28_v3 }
  0x2f   :  { %67 = vst [vmem:[#allocation5] sm:$0xff] %v65_v40 }
  0x30   :  { %68 = vst [vmem:[#allocation5 + $0x8] sm:$0xff] %v66_v41 }
  0x31   :  { %81 = dma.vmem_to_hbm [thread:$0]  %s74_s13, 256, %s76_s16, [#allocation4], %s145_s11, %s145_s11, %s146_s12  }
  0x32   :  { %142 = dma.done.wait [#allocation4], 256  }
  0x33   :  { %143 = vsyncadd [#allocation4], 4294967040 }
  0x34   :  { %86 = vsyncpa [#allocation3], 1 }
  0x35   :  { %87 = vsyncpa [#allocation4], 1 }

</bundles_post_ra>
